<compile_context>
chip_gen: v7x
topology: tpu7x:2x2x1
jax: 0.10.0
libtpu: 0.0.40
codegen_flags: <defaults>
</compile_context>

<pallas_src>
import functools

import jax
import jax.numpy as jnp
from jax.experimental import pallas as pl
from jax.experimental.pallas import tpu as pltpu


@functools.lru_cache(maxsize=None)
def _roll_down_sign() -> int:
    """Sign s such that pltpu.roll(v, (s*d) % 128, axis=1)[:, i] == v[:, (i+d) % 128].

    pltpu.roll is expected to match jnp.roll (s = -1), but the segmented
    reduction below depends on the rotation direction, so probe it once on the
    actual backend instead of assuming.
    """
    def probe(x_ref, o_ref):
        o_ref[...] = pltpu.roll(x_ref[...], shift=1, axis=1)

    x = jnp.broadcast_to(jnp.arange(128, dtype=jnp.float32), (8, 128))
    out = pl.pallas_call(
        probe, out_shape=jax.ShapeDtypeStruct((8, 128), jnp.float32))(x)
    first = int(jax.device_get(out)[0, 0])
    if first == 127:   # jnp.roll convention: out[i] = x[i - shift]
        return -1
    if first == 1:     # opposite convention: out[i] = x[i + shift]
        return 1
    raise RuntimeError(f"Unexpected pltpu.roll probe result: {first}")


def decoder_kernel(x_ref, w_ref, b_ref, o_ref, *, hp, p_pack, roll_sign):
    """Per-tile ReLU(<x_row, w> + b) for p_pack lane-packed batch rows.

    x_ref: (R, 128)  p_pack batch rows of hp features packed per row   (VMEM)
    w_ref: (1, 128)  lane-packed f32 weight row (w tiled p_pack times) (VMEM)
    b_ref: (1, 1)    f32 bias scalar                                   (SMEM)
    o_ref: (R, p_pack)  one output per packed batch row                (VMEM)
    """
    def roll_down(v, d):
        # result[:, i] = v[:, (i + d) % 128]
        return pltpu.roll(v, shift=(roll_sign * d) % 128, axis=1)

    # Exact f32 elementwise product on the VPU (bf16 inputs are upcast here).
    prod = x_ref[...].astype(jnp.float32) * w_ref[...].astype(jnp.float32)

    # 1) Segmented sum over each group of `hp` lanes (log2(hp) XLU rotates):
    #    afterwards lane g*hp holds the sum of lanes [g*hp, (g+1)*hp).
    s = prod
    d = 1
    while d < hp:
        s = s + roll_down(s, d)
        d *= 2

    # 2) Compact the p_pack group sums from lanes {0, hp, 2*hp, ...} down to
    #    lanes {0, ..., p_pack-1} (log2(p_pack) XLU rotates, masked merges).
    if hp > 1 and p_pack > 1:
        lanes = jax.lax.broadcasted_iota(jnp.int32, s.shape, 1)
        z = jnp.where((lanes & (hp - 1)) == 0, s, 0.0)
        blk, vals = hp, 1
        while blk < 128:
            right = (lanes & blk) != 0
            moved = roll_down(jnp.where(right, z, 0.0), blk - vals)
            z = jnp.where(right, 0.0, z) + moved
            blk, vals = blk * 2, vals * 2
    else:
        z = s

    y = z[:, :p_pack] + b_ref[0, 0]             # scalar bias from SMEM
    o_ref[...] = jnp.maximum(y, 0.0).astype(o_ref.dtype)


def numerical_decoder(x, w_linear, b_linear, *, target_tile_bytes=4 * 1024 * 1024):
    """ReLU(x @ w_linear.T + b_linear) for nn.Linear(H, 1); x: (B, H) -> (B, 1)."""
    B, H = x.shape
    w = jnp.asarray(w_linear).reshape(-1).astype(jnp.float32)
    assert w.shape == (H,)
    b = jnp.asarray(b_linear).reshape(-1).astype(jnp.float32)
    assert b.shape == (1,)

    if H > 128:
        # TODO(synk): output_size > 128 needs a lane-tiled (or MXU) reduction variant.
        raise NotImplementedError("NumericalDecoder kernel supports output_size <= 128")

    Hp = pl.next_power_of_2(H)          # smallest power of two >= H (divides 128)
    P = 128 // Hp                       # batch rows packed per 128-lane vreg row

    Bm = (B // P) * P                   # rows handled by the packed kernel
    rem = B - Bm                        # <= P-1 leftover rows -> pure-JAX tail

    parts = []
    if Bm > 0:
        if Hp != H:
            # Minor-dim zero pad (one copy) to keep lane packing; padded lanes
            # multiply against zero weights so the result is unchanged.
            x_k = jnp.pad(x, ((0, 0), (0, Hp - H)))
        else:
            x_k = x
        x_main = x_k if rem == 0 else x_k[:Bm]       # zero-copy when B % P == 0
        num_rows = Bm // P
        xp = x_main.reshape(num_rows, 128)           # free: row-major contiguous

        # Lane-packed weight row: lane p*Hp + h carries w[h].
        w_row = jnp.tile(jnp.pad(w, (0, Hp - H)), P).reshape(1, 128)
        b_sc = b.reshape(1, 1)

        # Tile sizing: ~target_tile_bytes of input per grid step (amortizes the
        # ~0.35us step overhead); big single-tile batches are split into >= 2
        # "parallel" steps so both v7x TensorCores get work; rows stay 8-aligned.
        bytes_per_row = 128 * x_k.dtype.itemsize
        tile_rows = max(8, (target_tile_bytes // bytes_per_row) // 8 * 8)
        if num_rows <= tile_rows:
            if num_rows >= 2048:
                tile_rows = pl.cdiv(pl.cdiv(num_rows, 2), 8) * 8
            else:
                tile_rows = num_rows                 # single full-extent block
        grid = (pl.cdiv(num_rows, tile_rows),)

        itemsize = x_k.dtype.itemsize
        cost = pl.CostEstimate(
            flops=2 * Bm * Hp,
            transcendentals=0,
            bytes_accessed=itemsize * (Bm * Hp + Bm) + 4 * 128,
        )

        kernel = functools.partial(
            decoder_kernel, hp=Hp, p_pack=P, roll_sign=_roll_down_sign())

        out_main = pl.pallas_call(
            kernel,
            out_shape=jax.ShapeDtypeStruct((num_rows, P), x_k.dtype),
            grid=grid,
            in_specs=[
                pl.BlockSpec((tile_rows, 128), lambda i: (i, 0)),    # lane-dense x tiles
                pl.BlockSpec((1, 128), lambda i: (0, 0)),            # resident weight row
                pl.BlockSpec(memory_space=pltpu.MemorySpace.SMEM),   # bias scalar
            ],
            out_specs=pl.BlockSpec((tile_rows, P), lambda i: (i, 0)),
            compiler_params=pltpu.CompilerParams(
                dimension_semantics=("parallel",),
                vmem_limit_bytes=32 * 1024 * 1024,
            ),
            cost_estimate=cost,
        )(xp, w_row, b_sc)

        # (num_rows, P) row-major == batch order; reshape is a free bitcast.
        parts.append(out_main.reshape(Bm, 1))

    if rem > 0:
        # Trivial tail for the < P leftover rows (avoids a full-array batch pad).
        xt = x[Bm:].astype(jnp.float32)
        tail = jnp.maximum(xt @ w.reshape(H, 1) + b, 0.0).astype(x.dtype)
        parts.append(tail)

    return parts[0] if len(parts) == 1 else jnp.concatenate(parts, axis=0)


if __name__ == "__main__":
    key = jax.random.PRNGKey(0)
    kx, kw, kb = jax.random.split(key, 3)

    def run_case(B, H, dtype, atol, rtol, **kw_args):
        x = jax.random.normal(kx, (B, H), dtype=jnp.float32).astype(dtype)
        w = jax.random.normal(kw, (1, H), dtype=jnp.float32) * 0.1  # nn.Linear(H,1).weight
        b = jax.random.normal(kb, (1,), dtype=jnp.float32) * 0.1    # nn.Linear(H,1).bias
        out = jax.block_until_ready(numerical_decoder(x, w, b, **kw_args))
        ref = jnp.maximum(x.astype(jnp.float32) @ w.T + b, 0.0)
        assert out.shape == (B, 1), (out.shape, B)
        err = jnp.max(jnp.abs(out.astype(jnp.float32) - ref))
        assert jnp.allclose(out.astype(jnp.float32), ref, atol=atol, rtol=rtol), \
            f"B={B} H={H} {dtype}: max abs err {err}"

    # params['output_size'] = 32 (typical config): aligned batch, zero-copy path.
    run_case(256, 32, jnp.float32, 1e-5, 1e-5)
    # Non-power-of-two output_size (24 -> padded to 32) + ragged batch (JAX tail).
    run_case(50, 24, jnp.float32, 1e-5, 1e-5)
    # bf16 activations accepted directly (f32 accumulate, bf16 output).
    run_case(512, 64, jnp.bfloat16, 2e-2, 2e-2)
    # Large batch: >= 2 "parallel" grid steps (megacore split) + ragged last block.
    run_case(16400, 32, jnp.float32, 1e-5, 1e-5)

    print("KERNEL_OK")
</pallas_src>

<mosaic_0001>
module attributes {stable_mosaic.version = 11 : i64} {
  func.func @probe(%arg0: memref<8x128xf32, #tpu.memory_space<vmem>>, %arg1: memref<8x128xf32, #tpu.memory_space<vmem>>) attributes {dimension_semantics = [], scalar_prefetch = 0 : i64, scratch_operands = 0 : i64, tpu.core_type = #tpu.core_type<tc>} {
    %c0 = arith.constant 0 : index
    %c0_0 = arith.constant 0 : index
    %0 = vector.load %arg0[%c0, %c0_0] : memref<8x128xf32, #tpu.memory_space<vmem>>, vector<8x128xf32>
    %c1_i32 = arith.constant 1 : i32
    %1 = tpu.dynamic_rotate %0 by %c1_i32 dim 1 : vector<8x128xf32>, i32 -> vector<8x128xf32>
    %c0_1 = arith.constant 0 : index
    %c0_2 = arith.constant 0 : index
    %2 = vector.load %arg1[%c0_1, %c0_2] : memref<8x128xf32, #tpu.memory_space<vmem>>, vector<8x128xf32>
    tpu.vector_store %arg1[%c0_1, %c0_2], %1 {strides = array<i32>} : memref<8x128xf32, #tpu.memory_space<vmem>>, vector<8x128xf32>,
    return
  }
}

</mosaic_0001>

<bundles_post_ra>
// kernel: tpu_custom_call.1
= control target key start
LH: loop header
LB: loop body
LE: loop exit
PB: predicated region body
PF: predicated region fallthrough
CT: control target
= control target key end

     0   :  { %6 = vsyncpa [#allocation3], 0  ;;  %s128_s0 = inlined_call_operand.hbm [shape: f32[8,128], index: 0, kind: input, shape index: {}]   ;;  %s129_s1 = inlined_call_operand.hbm [shape: f32[8,128], index: 1, kind: output, shape index: {}]  }
   0x1   :  { %7 = vsyncpa [#allocation4], 0  ;;  %s91_s6 = smov [#allocation2]   ;;  %s43_s10 = scalar_lea.hbm %s128_s0, 128 }
   0x2   :  { %s14_s7 = sshll.u32 %s91_s6, 4  ;;  %p44_p0 = scmp.ne.s32.totalorder %s128_s0, %s43_s10  ;;  %s15_s7 = int_to_ptr.vmem [resolvable:$true] %s14_s7 }
   0x3   :  { %p47_p1 = scmp.lt.u32.totalorder %s43_s10, %s128_s0 }
   0x5   :  { %p49_p2 = pnand %p47_p1, %p44_p0 }
   0x7   :  { %52 = shalt.err (!%p49_p2)
}
   0x8   :  { %s53_s15 = scalar_lea.vmem %s15_s7, 128  ;;  %p58_p4 = scmp.lt.s32.totalorder %s15_s7, %s15_s7 }
   0x9   :  { %p54_p3 = scmp.ne.s32.totalorder %s15_s7, %s53_s15  ;;  %p59_p5 = scmp.lt.s32.totalorder %s53_s15, %s53_s15 }
   0xb   :  { %p60_p6 = por %p59_p5, %p58_p4 }
   0xd   :  { %p61_p7 = pnand %p60_p6, %p54_p3 }
   0xf   :  { %64 = shalt.err (!%p61_p7)
}
  0x10   :  { %17 = dma.hbm_to_vmem [thread:$0]  %s128_s0, 128, %s15_s7, [#allocation3]  }
  0x11   :  { %87 = dma.done.wait [#allocation3], 128  }
  0x12   :  { %88 = vsyncadd [#allocation3], 4294967168  ;;  %v21_v0 = vld [vmem:[#allocation2] sm:$0xff]  ;;  %s92_s18 = smov 1   ;;  %s93_s19 = smov [#allocation5]  }
  0x13   :  { %22 = vrot.lane.b32.xlu0 %v21_v0, %s92_s18  ;;  %s31_s20 = sshll.u32 %s93_s19, 4  ;;  %s32_s20 = int_to_ptr.vmem [resolvable:$true] %s31_s20 }
  0x14   :  { %s65_s21 = scalar_lea.vmem %s32_s20, 128  ;;  %p70_p9 = scmp.lt.s32.totalorder %s32_s20, %s32_s20 }
  0x15   :  { %p66_p8 = scmp.ne.s32.totalorder %s32_s20, %s65_s21  ;;  %p71_p10 = scmp.lt.s32.totalorder %s65_s21, %s65_s21 }
  0x17   :  { %p72_p11 = por %p71_p10, %p70_p9 }
  0x19   :  { %p73_p12 = pnand %p72_p11, %p66_p8 }
  0x85   :  { %v23_v1 = vpop.permute.xlu0 %22 }
  0x86   :  { %24 = vst [vmem:[#allocation5] sm:$0xff] %v23_v1 }
  0x87   :  { %76 = shalt.err (!%p73_p12)
}
  0x88   :  { %s77_s0 = scalar_lea.hbm %s129_s1, 128 }
  0x89   :  { %p78_p13 = scmp.ne.s32.totalorder %s129_s1, %s77_s0  ;;  %p81_p0 = scmp.lt.u32.totalorder %s77_s0, %s129_s1 }
  0x8b   :  { %p83_p1 = pnand %p81_p0, %p78_p13 }
  0x8d   :  { %86 = shalt.err (!%p83_p1)
}
  0x8e   :  { %34 = dma.vmem_to_hbm [thread:$0]  %s32_s20, 128, %s129_s1, [#allocation4]  }
  0x8f   :  { %89 = dma.done.wait [#allocation4], 128  }
  0x90   :  { %90 = vsyncadd [#allocation4], 4294967168 }
  0x91   :  { %38 = vsyncpa [#allocation3], 1 }
  0x92   :  { %39 = vsyncpa [#allocation4], 1 }

</bundles_post_ra>
